<compile_context>
chip_gen: v5e
topology: v5e:2x2
jax: 0.10.0
libtpu: 0.0.40
codegen_flags: <defaults>
</compile_context>

<pallas_src>
import functools

import jax
import jax.numpy as jnp
from jax.experimental import pallas as pl
from jax.experimental.pallas import tpu as pltpu


def _patchify_kernel(x_ref, o_ref, *, C, P, RH):
    # x_ref: (1, C, RH*P, WP, P)   RH patch-rows of one image, W pre-split
    # o_ref: (1, RH, WP, C*P*P)    lane-dense patch rows
    for r in range(RH):  # RH is small (<=16); static unroll is cheap
        # Each piece is a full-width (WP, P) tile: one logical load per strip
        # row, no per-patch micro-slicing.  Concatenating the C*P pieces along
        # the lane axis yields the (WP, C*P*P) block in exactly the
        # (c, p, q) flattening order of the PyTorch permute/reshape.
        pieces = [
            x_ref[0, c, r * P + p, :, :]
            for c in range(C)
            for p in range(P)
        ]
        o_ref[0, r, :, :] = jnp.concatenate(pieces, axis=-1)


def _rows_per_block(HP, P, WP, C, itemsize):
    """Patch rows processed per grid step.

    Aligned so RH*P is a multiple of the packed sublane tile for the dtype
    (8 for 4-byte, 16 for 2-byte, 32 for 1-byte), then grown to amortize
    per-step overhead while keeping double-buffered in+out blocks small.
    """
    pack = {1: 32, 2: 16}.get(int(itemsize), 8)
    rows = 1
    for cand in range(1, HP + 1):
        if HP % cand == 0 and (cand * P) % pack == 0 and cand <= 16:
            rows = cand
            break

    sub = ((WP + 7) // 8) * 8  # sublane-padded WP

    def both_blocks_bytes(r):
        in_blk = C * r * P * sub * 128 * 4          # lane-padded input (upper bound)
        out_blk = r * sub * C * P * P * itemsize    # dense output block
        return 2 * (in_blk + out_blk)               # double-buffered

    while (2 * rows <= min(HP, 16) and HP % (2 * rows) == 0
           and both_blocks_bytes(2 * rows) <= (8 << 20)):
        rows *= 2
    return rows


def image_to_patches(x, patch_size):
    """Pallas equivalent of ImageToPatches.forward for NCHW input."""
    B, C, H, W = x.shape
    P = patch_size
    assert H % P == 0 and W % P == 0, "spatial dims must be divisible by P"
    HP, WP = H // P, W // P
    CPP = C * P * P
    itemsize = jnp.dtype(x.dtype).itemsize

    RH = _rows_per_block(HP, P, WP, C, itemsize)

    # Metadata-only split of W so the kernel sees (WP, P) tiles directly.
    x5 = x.reshape(B, C, H, WP, P)

    kernel = functools.partial(_patchify_kernel, C=C, P=P, RH=RH)

    out4 = pl.pallas_call(
        kernel,
        out_shape=jax.ShapeDtypeStruct((B, HP, WP, CPP), x.dtype),
        grid=(B, HP // RH),
        in_specs=[
            # Last two block dims equal the full array dims -> always legal.
            pl.BlockSpec((1, C, RH * P, WP, P), lambda b, i: (b, 0, i, 0, 0)),
        ],
        out_specs=pl.BlockSpec((1, RH, WP, CPP), lambda b, i: (b, i, 0, 0)),
        compiler_params=pltpu.CompilerParams(
            # Both axes independent: batch and patch-row strips; lets v7x
            # shard the strip axis across its 2 TensorCores even at B=1.
            dimension_semantics=("parallel", "parallel"),
            # Generous but safe on every generation (v7x physical = 64 MiB);
            # actual double-buffered usage is a few MiB at most.
            vmem_limit_bytes=48 * 1024 * 1024,
        ),
        cost_estimate=pl.CostEstimate(
            flops=0,
            transcendentals=0,
            bytes_accessed=2 * B * C * H * W * itemsize,
        ),
    )(x5)

    # Pure metadata reshape: (B, HP, WP, CPP) -> (B, HP*WP, CPP)
    return out4.reshape(B, HP * WP, CPP)


def _reference(x, patch_size):
    # Pure-JAX reference reproducing the PyTorch forward exactly.
    B, C, H, W = x.shape
    P = patch_size
    y = x.reshape(B, C, H // P, P, W // P, P)
    y = jnp.transpose(y, (0, 2, 4, 1, 3, 5))
    return y.reshape(B, (H // P) * (W // P), C * P * P)


if __name__ == "__main__":
    # Small, deterministic example consistent with the module:
    # batch=2, channels=4, spatial=16x16, patch_size=8 -> (2, 4, 256) output.
    key = jax.random.PRNGKey(0)
    B, C, H, W = 2, 4, 16, 16
    P = 8
    x = jax.random.normal(key, (B, C, H, W), dtype=jnp.float32)

    out = image_to_patches(x, P)
    out = jax.block_until_ready(out)

    ref = _reference(x, P)
    assert out.shape == (B, (H // P) * (W // P), C * P * P), out.shape
    assert jnp.allclose(out, ref), "mismatch vs. reference"

    print("KERNEL_OK")
</pallas_src>

<mosaic_0001>
module attributes {stable_mosaic.version = 11 : i64} {
  func.func @_patchify_kernel(%arg0: i32, %arg1: i32, %arg2: memref<1x4x16x2x8xf32, #tpu.memory_space<vmem>>, %arg3: memref<1x2x2x256xf32, #tpu.memory_space<vmem>>) attributes {dimension_semantics = [#tpu.dimension_semantics<parallel>, #tpu.dimension_semantics<parallel>], iteration_bounds = array<i64: 2, 1>, scalar_prefetch = 0 : i64, scratch_operands = 0 : i64, tpu.core_type = #tpu.core_type<tc>, window_params = [{transform_indices = @transform_0, window_bounds = array<i64: 1, 4, 16, 2, 8>}, {transform_indices = @transform_1, window_bounds = array<i64: 1, 2, 2, 256>}]} {
    %c0 = arith.constant 0 : index
    %c0_0 = arith.constant 0 : index
    %c0_1 = arith.constant 0 : index
    %c0_2 = arith.constant 0 : index
    %c0_3 = arith.constant 0 : index
    %0 = vector.load %arg2[%c0, %c0_0, %c0_1, %c0_2, %c0_3] : memref<1x4x16x2x8xf32, #tpu.memory_space<vmem>>, vector<1x1x1x2x8xf32>
    %1 = vector.shape_cast %0 : vector<1x1x1x2x8xf32> to vector<2x8xf32>
    %c0_4 = arith.constant 0 : index
    %c0_5 = arith.constant 0 : index
    %c1 = arith.constant 1 : index
    %c0_6 = arith.constant 0 : index
    %c0_7 = arith.constant 0 : index
    %2 = vector.load %arg2[%c0_4, %c0_5, %c1, %c0_6, %c0_7] : memref<1x4x16x2x8xf32, #tpu.memory_space<vmem>>, vector<1x1x1x2x8xf32>
    %3 = vector.shape_cast %2 : vector<1x1x1x2x8xf32> to vector<2x8xf32>
    %c0_8 = arith.constant 0 : index
    %c0_9 = arith.constant 0 : index
    %c2 = arith.constant 2 : index
    %c0_10 = arith.constant 0 : index
    %c0_11 = arith.constant 0 : index
    %4 = vector.load %arg2[%c0_8, %c0_9, %c2, %c0_10, %c0_11] : memref<1x4x16x2x8xf32, #tpu.memory_space<vmem>>, vector<1x1x1x2x8xf32>
    %5 = vector.shape_cast %4 : vector<1x1x1x2x8xf32> to vector<2x8xf32>
    %c0_12 = arith.constant 0 : index
    %c0_13 = arith.constant 0 : index
    %c3 = arith.constant 3 : index
    %c0_14 = arith.constant 0 : index
    %c0_15 = arith.constant 0 : index
    %6 = vector.load %arg2[%c0_12, %c0_13, %c3, %c0_14, %c0_15] : memref<1x4x16x2x8xf32, #tpu.memory_space<vmem>>, vector<1x1x1x2x8xf32>
    %7 = vector.shape_cast %6 : vector<1x1x1x2x8xf32> to vector<2x8xf32>
    %c0_16 = arith.constant 0 : index
    %c0_17 = arith.constant 0 : index
    %c4 = arith.constant 4 : index
    %c0_18 = arith.constant 0 : index
    %c0_19 = arith.constant 0 : index
    %8 = vector.load %arg2[%c0_16, %c0_17, %c4, %c0_18, %c0_19] : memref<1x4x16x2x8xf32, #tpu.memory_space<vmem>>, vector<1x1x1x2x8xf32>
    %9 = vector.shape_cast %8 : vector<1x1x1x2x8xf32> to vector<2x8xf32>
    %c0_20 = arith.constant 0 : index
    %c0_21 = arith.constant 0 : index
    %c5 = arith.constant 5 : index
    %c0_22 = arith.constant 0 : index
    %c0_23 = arith.constant 0 : index
    %10 = vector.load %arg2[%c0_20, %c0_21, %c5, %c0_22, %c0_23] : memref<1x4x16x2x8xf32, #tpu.memory_space<vmem>>, vector<1x1x1x2x8xf32>
    %11 = vector.shape_cast %10 : vector<1x1x1x2x8xf32> to vector<2x8xf32>
    %c0_24 = arith.constant 0 : index
    %c0_25 = arith.constant 0 : index
    %c6 = arith.constant 6 : index
    %c0_26 = arith.constant 0 : index
    %c0_27 = arith.constant 0 : index
    %12 = vector.load %arg2[%c0_24, %c0_25, %c6, %c0_26, %c0_27] : memref<1x4x16x2x8xf32, #tpu.memory_space<vmem>>, vector<1x1x1x2x8xf32>
    %13 = vector.shape_cast %12 : vector<1x1x1x2x8xf32> to vector<2x8xf32>
    %c0_28 = arith.constant 0 : index
    %c0_29 = arith.constant 0 : index
    %c7 = arith.constant 7 : index
    %c0_30 = arith.constant 0 : index
    %c0_31 = arith.constant 0 : index
    %14 = vector.load %arg2[%c0_28, %c0_29, %c7, %c0_30, %c0_31] : memref<1x4x16x2x8xf32, #tpu.memory_space<vmem>>, vector<1x1x1x2x8xf32>
    %15 = vector.shape_cast %14 : vector<1x1x1x2x8xf32> to vector<2x8xf32>
    %c0_32 = arith.constant 0 : index
    %c1_33 = arith.constant 1 : index
    %c0_34 = arith.constant 0 : index
    %c0_35 = arith.constant 0 : index
    %c0_36 = arith.constant 0 : index
    %16 = vector.load %arg2[%c0_32, %c1_33, %c0_34, %c0_35, %c0_36] : memref<1x4x16x2x8xf32, #tpu.memory_space<vmem>>, vector<1x1x1x2x8xf32>
    %17 = vector.shape_cast %16 : vector<1x1x1x2x8xf32> to vector<2x8xf32>
    %c0_37 = arith.constant 0 : index
    %c1_38 = arith.constant 1 : index
    %c1_39 = arith.constant 1 : index
    %c0_40 = arith.constant 0 : index
    %c0_41 = arith.constant 0 : index
    %18 = vector.load %arg2[%c0_37, %c1_38, %c1_39, %c0_40, %c0_41] : memref<1x4x16x2x8xf32, #tpu.memory_space<vmem>>, vector<1x1x1x2x8xf32>
    %19 = vector.shape_cast %18 : vector<1x1x1x2x8xf32> to vector<2x8xf32>
    %c0_42 = arith.constant 0 : index
    %c1_43 = arith.constant 1 : index
    %c2_44 = arith.constant 2 : index
    %c0_45 = arith.constant 0 : index
    %c0_46 = arith.constant 0 : index
    %20 = vector.load %arg2[%c0_42, %c1_43, %c2_44, %c0_45, %c0_46] : memref<1x4x16x2x8xf32, #tpu.memory_space<vmem>>, vector<1x1x1x2x8xf32>
    %21 = vector.shape_cast %20 : vector<1x1x1x2x8xf32> to vector<2x8xf32>
    %c0_47 = arith.constant 0 : index
    %c1_48 = arith.constant 1 : index
    %c3_49 = arith.constant 3 : index
    %c0_50 = arith.constant 0 : index
    %c0_51 = arith.constant 0 : index
    %22 = vector.load %arg2[%c0_47, %c1_48, %c3_49, %c0_50, %c0_51] : memref<1x4x16x2x8xf32, #tpu.memory_space<vmem>>, vector<1x1x1x2x8xf32>
    %23 = vector.shape_cast %22 : vector<1x1x1x2x8xf32> to vector<2x8xf32>
    %c0_52 = arith.constant 0 : index
    %c1_53 = arith.constant 1 : index
    %c4_54 = arith.constant 4 : index
    %c0_55 = arith.constant 0 : index
    %c0_56 = arith.constant 0 : index
    %24 = vector.load %arg2[%c0_52, %c1_53, %c4_54, %c0_55, %c0_56] : memref<1x4x16x2x8xf32, #tpu.memory_space<vmem>>, vector<1x1x1x2x8xf32>
    %25 = vector.shape_cast %24 : vector<1x1x1x2x8xf32> to vector<2x8xf32>
    %c0_57 = arith.constant 0 : index
    %c1_58 = arith.constant 1 : index
    %c5_59 = arith.constant 5 : index
    %c0_60 = arith.constant 0 : index
    %c0_61 = arith.constant 0 : index
    %26 = vector.load %arg2[%c0_57, %c1_58, %c5_59, %c0_60, %c0_61] : memref<1x4x16x2x8xf32, #tpu.memory_space<vmem>>, vector<1x1x1x2x8xf32>
    %27 = vector.shape_cast %26 : vector<1x1x1x2x8xf32> to vector<2x8xf32>
    %c0_62 = arith.constant 0 : index
    %c1_63 = arith.constant 1 : index
    %c6_64 = arith.constant 6 : index
    %c0_65 = arith.constant 0 : index
    %c0_66 = arith.constant 0 : index
    %28 = vector.load %arg2[%c0_62, %c1_63, %c6_64, %c0_65, %c0_66] : memref<1x4x16x2x8xf32, #tpu.memory_space<vmem>>, vector<1x1x1x2x8xf32>
    %29 = vector.shape_cast %28 : vector<1x1x1x2x8xf32> to vector<2x8xf32>
    %c0_67 = arith.constant 0 : index
    %c1_68 = arith.constant 1 : index
    %c7_69 = arith.constant 7 : index
    %c0_70 = arith.constant 0 : index
    %c0_71 = arith.constant 0 : index
    %30 = vector.load %arg2[%c0_67, %c1_68, %c7_69, %c0_70, %c0_71] : memref<1x4x16x2x8xf32, #tpu.memory_space<vmem>>, vector<1x1x1x2x8xf32>
    %31 = vector.shape_cast %30 : vector<1x1x1x2x8xf32> to vector<2x8xf32>
    %c0_72 = arith.constant 0 : index
    %c2_73 = arith.constant 2 : index
    %c0_74 = arith.constant 0 : index
    %c0_75 = arith.constant 0 : index
    %c0_76 = arith.constant 0 : index
    %32 = vector.load %arg2[%c0_72, %c2_73, %c0_74, %c0_75, %c0_76] : memref<1x4x16x2x8xf32, #tpu.memory_space<vmem>>, vector<1x1x1x2x8xf32>
    %33 = vector.shape_cast %32 : vector<1x1x1x2x8xf32> to vector<2x8xf32>
    %c0_77 = arith.constant 0 : index
    %c2_78 = arith.constant 2 : index
    %c1_79 = arith.constant 1 : index
    %c0_80 = arith.constant 0 : index
    %c0_81 = arith.constant 0 : index
    %34 = vector.load %arg2[%c0_77, %c2_78, %c1_79, %c0_80, %c0_81] : memref<1x4x16x2x8xf32, #tpu.memory_space<vmem>>, vector<1x1x1x2x8xf32>
    %35 = vector.shape_cast %34 : vector<1x1x1x2x8xf32> to vector<2x8xf32>
    %c0_82 = arith.constant 0 : index
    %c2_83 = arith.constant 2 : index
    %c2_84 = arith.constant 2 : index
    %c0_85 = arith.constant 0 : index
    %c0_86 = arith.constant 0 : index
    %36 = vector.load %arg2[%c0_82, %c2_83, %c2_84, %c0_85, %c0_86] : memref<1x4x16x2x8xf32, #tpu.memory_space<vmem>>, vector<1x1x1x2x8xf32>
    %37 = vector.shape_cast %36 : vector<1x1x1x2x8xf32> to vector<2x8xf32>
    %c0_87 = arith.constant 0 : index
    %c2_88 = arith.constant 2 : index
    %c3_89 = arith.constant 3 : index
    %c0_90 = arith.constant 0 : index
    %c0_91 = arith.constant 0 : index
    %38 = vector.load %arg2[%c0_87, %c2_88, %c3_89, %c0_90, %c0_91] : memref<1x4x16x2x8xf32, #tpu.memory_space<vmem>>, vector<1x1x1x2x8xf32>
    %39 = vector.shape_cast %38 : vector<1x1x1x2x8xf32> to vector<2x8xf32>
    %c0_92 = arith.constant 0 : index
    %c2_93 = arith.constant 2 : index
    %c4_94 = arith.constant 4 : index
    %c0_95 = arith.constant 0 : index
    %c0_96 = arith.constant 0 : index
    %40 = vector.load %arg2[%c0_92, %c2_93, %c4_94, %c0_95, %c0_96] : memref<1x4x16x2x8xf32, #tpu.memory_space<vmem>>, vector<1x1x1x2x8xf32>
    %41 = vector.shape_cast %40 : vector<1x1x1x2x8xf32> to vector<2x8xf32>
    %c0_97 = arith.constant 0 : index
    %c2_98 = arith.constant 2 : index
    %c5_99 = arith.constant 5 : index
    %c0_100 = arith.constant 0 : index
    %c0_101 = arith.constant 0 : index
    %42 = vector.load %arg2[%c0_97, %c2_98, %c5_99, %c0_100, %c0_101] : memref<1x4x16x2x8xf32, #tpu.memory_space<vmem>>, vector<1x1x1x2x8xf32>
    %43 = vector.shape_cast %42 : vector<1x1x1x2x8xf32> to vector<2x8xf32>
    %c0_102 = arith.constant 0 : index
    %c2_103 = arith.constant 2 : index
    %c6_104 = arith.constant 6 : index
    %c0_105 = arith.constant 0 : index
    %c0_106 = arith.constant 0 : index
    %44 = vector.load %arg2[%c0_102, %c2_103, %c6_104, %c0_105, %c0_106] : memref<1x4x16x2x8xf32, #tpu.memory_space<vmem>>, vector<1x1x1x2x8xf32>
    %45 = vector.shape_cast %44 : vector<1x1x1x2x8xf32> to vector<2x8xf32>
    %c0_107 = arith.constant 0 : index
    %c2_108 = arith.constant 2 : index
    %c7_109 = arith.constant 7 : index
    %c0_110 = arith.constant 0 : index
    %c0_111 = arith.constant 0 : index
    %46 = vector.load %arg2[%c0_107, %c2_108, %c7_109, %c0_110, %c0_111] : memref<1x4x16x2x8xf32, #tpu.memory_space<vmem>>, vector<1x1x1x2x8xf32>
    %47 = vector.shape_cast %46 : vector<1x1x1x2x8xf32> to vector<2x8xf32>
    %c0_112 = arith.constant 0 : index
    %c3_113 = arith.constant 3 : index
    %c0_114 = arith.constant 0 : index
    %c0_115 = arith.constant 0 : index
    %c0_116 = arith.constant 0 : index
    %48 = vector.load %arg2[%c0_112, %c3_113, %c0_114, %c0_115, %c0_116] : memref<1x4x16x2x8xf32, #tpu.memory_space<vmem>>, vector<1x1x1x2x8xf32>
    %49 = vector.shape_cast %48 : vector<1x1x1x2x8xf32> to vector<2x8xf32>
    %c0_117 = arith.constant 0 : index
    %c3_118 = arith.constant 3 : index
    %c1_119 = arith.constant 1 : index
    %c0_120 = arith.constant 0 : index
    %c0_121 = arith.constant 0 : index
    %50 = vector.load %arg2[%c0_117, %c3_118, %c1_119, %c0_120, %c0_121] : memref<1x4x16x2x8xf32, #tpu.memory_space<vmem>>, vector<1x1x1x2x8xf32>
    %51 = vector.shape_cast %50 : vector<1x1x1x2x8xf32> to vector<2x8xf32>
    %c0_122 = arith.constant 0 : index
    %c3_123 = arith.constant 3 : index
    %c2_124 = arith.constant 2 : index
    %c0_125 = arith.constant 0 : index
    %c0_126 = arith.constant 0 : index
    %52 = vector.load %arg2[%c0_122, %c3_123, %c2_124, %c0_125, %c0_126] : memref<1x4x16x2x8xf32, #tpu.memory_space<vmem>>, vector<1x1x1x2x8xf32>
    %53 = vector.shape_cast %52 : vector<1x1x1x2x8xf32> to vector<2x8xf32>
    %c0_127 = arith.constant 0 : index
    %c3_128 = arith.constant 3 : index
    %c3_129 = arith.constant 3 : index
    %c0_130 = arith.constant 0 : index
    %c0_131 = arith.constant 0 : index
    %54 = vector.load %arg2[%c0_127, %c3_128, %c3_129, %c0_130, %c0_131] : memref<1x4x16x2x8xf32, #tpu.memory_space<vmem>>, vector<1x1x1x2x8xf32>
    %55 = vector.shape_cast %54 : vector<1x1x1x2x8xf32> to vector<2x8xf32>
    %c0_132 = arith.constant 0 : index
    %c3_133 = arith.constant 3 : index
    %c4_134 = arith.constant 4 : index
    %c0_135 = arith.constant 0 : index
    %c0_136 = arith.constant 0 : index
    %56 = vector.load %arg2[%c0_132, %c3_133, %c4_134, %c0_135, %c0_136] : memref<1x4x16x2x8xf32, #tpu.memory_space<vmem>>, vector<1x1x1x2x8xf32>
    %57 = vector.shape_cast %56 : vector<1x1x1x2x8xf32> to vector<2x8xf32>
    %c0_137 = arith.constant 0 : index
    %c3_138 = arith.constant 3 : index
    %c5_139 = arith.constant 5 : index
    %c0_140 = arith.constant 0 : index
    %c0_141 = arith.constant 0 : index
    %58 = vector.load %arg2[%c0_137, %c3_138, %c5_139, %c0_140, %c0_141] : memref<1x4x16x2x8xf32, #tpu.memory_space<vmem>>, vector<1x1x1x2x8xf32>
    %59 = vector.shape_cast %58 : vector<1x1x1x2x8xf32> to vector<2x8xf32>
    %c0_142 = arith.constant 0 : index
    %c3_143 = arith.constant 3 : index
    %c6_144 = arith.constant 6 : index
    %c0_145 = arith.constant 0 : index
    %c0_146 = arith.constant 0 : index
    %60 = vector.load %arg2[%c0_142, %c3_143, %c6_144, %c0_145, %c0_146] : memref<1x4x16x2x8xf32, #tpu.memory_space<vmem>>, vector<1x1x1x2x8xf32>
    %61 = vector.shape_cast %60 : vector<1x1x1x2x8xf32> to vector<2x8xf32>
    %c0_147 = arith.constant 0 : index
    %c3_148 = arith.constant 3 : index
    %c7_149 = arith.constant 7 : index
    %c0_150 = arith.constant 0 : index
    %c0_151 = arith.constant 0 : index
    %62 = vector.load %arg2[%c0_147, %c3_148, %c7_149, %c0_150, %c0_151] : memref<1x4x16x2x8xf32, #tpu.memory_space<vmem>>, vector<1x1x1x2x8xf32>
    %63 = vector.shape_cast %62 : vector<1x1x1x2x8xf32> to vector<2x8xf32>
    %64 = tpu.concatenate %1, %3, %5, %7, %9, %11, %13, %15, %17, %19, %21, %23, %25, %27, %29, %31 in 1 : vector<2x8xf32>, vector<2x8xf32>, vector<2x8xf32>, vector<2x8xf32>, vector<2x8xf32>, vector<2x8xf32>, vector<2x8xf32>, vector<2x8xf32>, vector<2x8xf32>, vector<2x8xf32>, vector<2x8xf32>, vector<2x8xf32>, vector<2x8xf32>, vector<2x8xf32>, vector<2x8xf32>, vector<2x8xf32> -> vector<2x128xf32>
    %65 = tpu.concatenate %33, %35, %37, %39, %41, %43, %45, %47, %49, %51, %53, %55, %57, %59, %61, %63 in 1 : vector<2x8xf32>, vector<2x8xf32>, vector<2x8xf32>, vector<2x8xf32>, vector<2x8xf32>, vector<2x8xf32>, vector<2x8xf32>, vector<2x8xf32>, vector<2x8xf32>, vector<2x8xf32>, vector<2x8xf32>, vector<2x8xf32>, vector<2x8xf32>, vector<2x8xf32>, vector<2x8xf32>, vector<2x8xf32> -> vector<2x128xf32>
    %66 = tpu.concatenate %64, %65 in 1 : vector<2x128xf32>, vector<2x128xf32> -> vector<2x256xf32>
    %c0_152 = arith.constant 0 : index
    %c0_153 = arith.constant 0 : index
    %c0_154 = arith.constant 0 : index
    %c0_155 = arith.constant 0 : index
    %67 = vector.load %arg3[%c0_152, %c0_153, %c0_154, %c0_155] : memref<1x2x2x256xf32, #tpu.memory_space<vmem>>, vector<1x1x2x256xf32>
    %68 = vector.shape_cast %67 : vector<1x1x2x256xf32> to vector<2x256xf32>
    %69 = vector.shape_cast %66 : vector<2x256xf32> to vector<1x1x2x256xf32>
    tpu.vector_store %arg3[%c0_152, %c0_153, %c0_154, %c0_155], %69 {strides = array<i32>} : memref<1x2x2x256xf32, #tpu.memory_space<vmem>>, vector<1x1x2x256xf32>,
    %c0_156 = arith.constant 0 : index
    %c0_157 = arith.constant 0 : index
    %c8 = arith.constant 8 : index
    %c0_158 = arith.constant 0 : index
    %c0_159 = arith.constant 0 : index
    %70 = vector.load %arg2[%c0_156, %c0_157, %c8, %c0_158, %c0_159] : memref<1x4x16x2x8xf32, #tpu.memory_space<vmem>>, vector<1x1x1x2x8xf32>
    %71 = vector.shape_cast %70 : vector<1x1x1x2x8xf32> to vector<2x8xf32>
    %c0_160 = arith.constant 0 : index
    %c0_161 = arith.constant 0 : index
    %c9 = arith.constant 9 : index
    %c0_162 = arith.constant 0 : index
    %c0_163 = arith.constant 0 : index
    %72 = vector.load %arg2[%c0_160, %c0_161, %c9, %c0_162, %c0_163] : memref<1x4x16x2x8xf32, #tpu.memory_space<vmem>>, vector<1x1x1x2x8xf32>
    %73 = vector.shape_cast %72 : vector<1x1x1x2x8xf32> to vector<2x8xf32>
    %c0_164 = arith.constant 0 : index
    %c0_165 = arith.constant 0 : index
    %c10 = arith.constant 10 : index
    %c0_166 = arith.constant 0 : index
    %c0_167 = arith.constant 0 : index
    %74 = vector.load %arg2[%c0_164, %c0_165, %c10, %c0_166, %c0_167] : memref<1x4x16x2x8xf32, #tpu.memory_space<vmem>>, vector<1x1x1x2x8xf32>
    %75 = vector.shape_cast %74 : vector<1x1x1x2x8xf32> to vector<2x8xf32>
    %c0_168 = arith.constant 0 : index
    %c0_169 = arith.constant 0 : index
    %c11 = arith.constant 11 : index
    %c0_170 = arith.constant 0 : index
    %c0_171 = arith.constant 0 : index
    %76 = vector.load %arg2[%c0_168, %c0_169, %c11, %c0_170, %c0_171] : memref<1x4x16x2x8xf32, #tpu.memory_space<vmem>>, vector<1x1x1x2x8xf32>
    %77 = vector.shape_cast %76 : vector<1x1x1x2x8xf32> to vector<2x8xf32>
    %c0_172 = arith.constant 0 : index
    %c0_173 = arith.constant 0 : index
    %c12 = arith.constant 12 : index
    %c0_174 = arith.constant 0 : index
    %c0_175 = arith.constant 0 : index
    %78 = vector.load %arg2[%c0_172, %c0_173, %c12, %c0_174, %c0_175] : memref<1x4x16x2x8xf32, #tpu.memory_space<vmem>>, vector<1x1x1x2x8xf32>
    %79 = vector.shape_cast %78 : vector<1x1x1x2x8xf32> to vector<2x8xf32>
    %c0_176 = arith.constant 0 : index
    %c0_177 = arith.constant 0 : index
    %c13 = arith.constant 13 : index
    %c0_178 = arith.constant 0 : index
    %c0_179 = arith.constant 0 : index
    %80 = vector.load %arg2[%c0_176, %c0_177, %c13, %c0_178, %c0_179] : memref<1x4x16x2x8xf32, #tpu.memory_space<vmem>>, vector<1x1x1x2x8xf32>
    %81 = vector.shape_cast %80 : vector<1x1x1x2x8xf32> to vector<2x8xf32>
    %c0_180 = arith.constant 0 : index
    %c0_181 = arith.constant 0 : index
    %c14 = arith.constant 14 : index
    %c0_182 = arith.constant 0 : index
    %c0_183 = arith.constant 0 : index
    %82 = vector.load %arg2[%c0_180, %c0_181, %c14, %c0_182, %c0_183] : memref<1x4x16x2x8xf32, #tpu.memory_space<vmem>>, vector<1x1x1x2x8xf32>
    %83 = vector.shape_cast %82 : vector<1x1x1x2x8xf32> to vector<2x8xf32>
    %c0_184 = arith.constant 0 : index
    %c0_185 = arith.constant 0 : index
    %c15 = arith.constant 15 : index
    %c0_186 = arith.constant 0 : index
    %c0_187 = arith.constant 0 : index
    %84 = vector.load %arg2[%c0_184, %c0_185, %c15, %c0_186, %c0_187] : memref<1x4x16x2x8xf32, #tpu.memory_space<vmem>>, vector<1x1x1x2x8xf32>
    %85 = vector.shape_cast %84 : vector<1x1x1x2x8xf32> to vector<2x8xf32>
    %c0_188 = arith.constant 0 : index
    %c1_189 = arith.constant 1 : index
    %c8_190 = arith.constant 8 : index
    %c0_191 = arith.constant 0 : index
    %c0_192 = arith.constant 0 : index
    %86 = vector.load %arg2[%c0_188, %c1_189, %c8_190, %c0_191, %c0_192] : memref<1x4x16x2x8xf32, #tpu.memory_space<vmem>>, vector<1x1x1x2x8xf32>
    %87 = vector.shape_cast %86 : vector<1x1x1x2x8xf32> to vector<2x8xf32>
    %c0_193 = arith.constant 0 : index
    %c1_194 = arith.constant 1 : index
    %c9_195 = arith.constant 9 : index
    %c0_196 = arith.constant 0 : index
    %c0_197 = arith.constant 0 : index
    %88 = vector.load %arg2[%c0_193, %c1_194, %c9_195, %c0_196, %c0_197] : memref<1x4x16x2x8xf32, #tpu.memory_space<vmem>>, vector<1x1x1x2x8xf32>
    %89 = vector.shape_cast %88 : vector<1x1x1x2x8xf32> to vector<2x8xf32>
    %c0_198 = arith.constant 0 : index
    %c1_199 = arith.constant 1 : index
    %c10_200 = arith.constant 10 : index
    %c0_201 = arith.constant 0 : index
    %c0_202 = arith.constant 0 : index
    %90 = vector.load %arg2[%c0_198, %c1_199, %c10_200, %c0_201, %c0_202] : memref<1x4x16x2x8xf32, #tpu.memory_space<vmem>>, vector<1x1x1x2x8xf32>
    %91 = vector.shape_cast %90 : vector<1x1x1x2x8xf32> to vector<2x8xf32>
    %c0_203 = arith.constant 0 : index
    %c1_204 = arith.constant 1 : index
    %c11_205 = arith.constant 11 : index
    %c0_206 = arith.constant 0 : index
    %c0_207 = arith.constant 0 : index
    %92 = vector.load %arg2[%c0_203, %c1_204, %c11_205, %c0_206, %c0_207] : memref<1x4x16x2x8xf32, #tpu.memory_space<vmem>>, vector<1x1x1x2x8xf32>
    %93 = vector.shape_cast %92 : vector<1x1x1x2x8xf32> to vector<2x8xf32>
    %c0_208 = arith.constant 0 : index
    %c1_209 = arith.constant 1 : index
    %c12_210 = arith.constant 12 : index
    %c0_211 = arith.constant 0 : index
    %c0_212 = arith.constant 0 : index
    %94 = vector.load %arg2[%c0_208, %c1_209, %c12_210, %c0_211, %c0_212] : memref<1x4x16x2x8xf32, #tpu.memory_space<vmem>>, vector<1x1x1x2x8xf32>
    %95 = vector.shape_cast %94 : vector<1x1x1x2x8xf32> to vector<2x8xf32>
    %c0_213 = arith.constant 0 : index
    %c1_214 = arith.constant 1 : index
    %c13_215 = arith.constant 13 : index
    %c0_216 = arith.constant 0 : index
    %c0_217 = arith.constant 0 : index
    %96 = vector.load %arg2[%c0_213, %c1_214, %c13_215, %c0_216, %c0_217] : memref<1x4x16x2x8xf32, #tpu.memory_space<vmem>>, vector<1x1x1x2x8xf32>
    %97 = vector.shape_cast %96 : vector<1x1x1x2x8xf32> to vector<2x8xf32>
    %c0_218 = arith.constant 0 : index
    %c1_219 = arith.constant 1 : index
    %c14_220 = arith.constant 14 : index
    %c0_221 = arith.constant 0 : index
    %c0_222 = arith.constant 0 : index
    %98 = vector.load %arg2[%c0_218, %c1_219, %c14_220, %c0_221, %c0_222] : memref<1x4x16x2x8xf32, #tpu.memory_space<vmem>>, vector<1x1x1x2x8xf32>
    %99 = vector.shape_cast %98 : vector<1x1x1x2x8xf32> to vector<2x8xf32>
    %c0_223 = arith.constant 0 : index
    %c1_224 = arith.constant 1 : index
    %c15_225 = arith.constant 15 : index
    %c0_226 = arith.constant 0 : index
    %c0_227 = arith.constant 0 : index
    %100 = vector.load %arg2[%c0_223, %c1_224, %c15_225, %c0_226, %c0_227] : memref<1x4x16x2x8xf32, #tpu.memory_space<vmem>>, vector<1x1x1x2x8xf32>
    %101 = vector.shape_cast %100 : vector<1x1x1x2x8xf32> to vector<2x8xf32>
    %c0_228 = arith.constant 0 : index
    %c2_229 = arith.constant 2 : index
    %c8_230 = arith.constant 8 : index
    %c0_231 = arith.constant 0 : index
    %c0_232 = arith.constant 0 : index
    %102 = vector.load %arg2[%c0_228, %c2_229, %c8_230, %c0_231, %c0_232] : memref<1x4x16x2x8xf32, #tpu.memory_space<vmem>>, vector<1x1x1x2x8xf32>
    %103 = vector.shape_cast %102 : vector<1x1x1x2x8xf32> to vector<2x8xf32>
    %c0_233 = arith.constant 0 : index
    %c2_234 = arith.constant 2 : index
    %c9_235 = arith.constant 9 : index
    %c0_236 = arith.constant 0 : index
    %c0_237 = arith.constant 0 : index
    %104 = vector.load %arg2[%c0_233, %c2_234, %c9_235, %c0_236, %c0_237] : memref<1x4x16x2x8xf32, #tpu.memory_space<vmem>>, vector<1x1x1x2x8xf32>
    %105 = vector.shape_cast %104 : vector<1x1x1x2x8xf32> to vector<2x8xf32>
    %c0_238 = arith.constant 0 : index
    %c2_239 = arith.constant 2 : index
    %c10_240 = arith.constant 10 : index
    %c0_241 = arith.constant 0 : index
    %c0_242 = arith.constant 0 : index
    %106 = vector.load %arg2[%c0_238, %c2_239, %c10_240, %c0_241, %c0_242] : memref<1x4x16x2x8xf32, #tpu.memory_space<vmem>>, vector<1x1x1x2x8xf32>
    %107 = vector.shape_cast %106 : vector<1x1x1x2x8xf32> to vector<2x8xf32>
    %c0_243 = arith.constant 0 : index
    %c2_244 = arith.constant 2 : index
    %c11_245 = arith.constant 11 : index
    %c0_246 = arith.constant 0 : index
    %c0_247 = arith.constant 0 : index
    %108 = vector.load %arg2[%c0_243, %c2_244, %c11_245, %c0_246, %c0_247] : memref<1x4x16x2x8xf32, #tpu.memory_space<vmem>>, vector<1x1x1x2x8xf32>
    %109 = vector.shape_cast %108 : vector<1x1x1x2x8xf32> to vector<2x8xf32>
    %c0_248 = arith.constant 0 : index
    %c2_249 = arith.constant 2 : index
    %c12_250 = arith.constant 12 : index
    %c0_251 = arith.constant 0 : index
    %c0_252 = arith.constant 0 : index
    %110 = vector.load %arg2[%c0_248, %c2_249, %c12_250, %c0_251, %c0_252] : memref<1x4x16x2x8xf32, #tpu.memory_space<vmem>>, vector<1x1x1x2x8xf32>
    %111 = vector.shape_cast %110 : vector<1x1x1x2x8xf32> to vector<2x8xf32>
    %c0_253 = arith.constant 0 : index
    %c2_254 = arith.constant 2 : index
    %c13_255 = arith.constant 13 : index
    %c0_256 = arith.constant 0 : index
    %c0_257 = arith.constant 0 : index
    %112 = vector.load %arg2[%c0_253, %c2_254, %c13_255, %c0_256, %c0_257] : memref<1x4x16x2x8xf32, #tpu.memory_space<vmem>>, vector<1x1x1x2x8xf32>
    %113 = vector.shape_cast %112 : vector<1x1x1x2x8xf32> to vector<2x8xf32>
    %c0_258 = arith.constant 0 : index
    %c2_259 = arith.constant 2 : index
    %c14_260 = arith.constant 14 : index
    %c0_261 = arith.constant 0 : index
    %c0_262 = arith.constant 0 : index
    %114 = vector.load %arg2[%c0_258, %c2_259, %c14_260, %c0_261, %c0_262] : memref<1x4x16x2x8xf32, #tpu.memory_space<vmem>>, vector<1x1x1x2x8xf32>
    %115 = vector.shape_cast %114 : vector<1x1x1x2x8xf32> to vector<2x8xf32>
    %c0_263 = arith.constant 0 : index
    %c2_264 = arith.constant 2 : index
    %c15_265 = arith.constant 15 : index
    %c0_266 = arith.constant 0 : index
    %c0_267 = arith.constant 0 : index
    %116 = vector.load %arg2[%c0_263, %c2_264, %c15_265, %c0_266, %c0_267] : memref<1x4x16x2x8xf32, #tpu.memory_space<vmem>>, vector<1x1x1x2x8xf32>
    %117 = vector.shape_cast %116 : vector<1x1x1x2x8xf32> to vector<2x8xf32>
    %c0_268 = arith.constant 0 : index
    %c3_269 = arith.constant 3 : index
    %c8_270 = arith.constant 8 : index
    %c0_271 = arith.constant 0 : index
    %c0_272 = arith.constant 0 : index
    %118 = vector.load %arg2[%c0_268, %c3_269, %c8_270, %c0_271, %c0_272] : memref<1x4x16x2x8xf32, #tpu.memory_space<vmem>>, vector<1x1x1x2x8xf32>
    %119 = vector.shape_cast %118 : vector<1x1x1x2x8xf32> to vector<2x8xf32>
    %c0_273 = arith.constant 0 : index
    %c3_274 = arith.constant 3 : index
    %c9_275 = arith.constant 9 : index
    %c0_276 = arith.constant 0 : index
    %c0_277 = arith.constant 0 : index
    %120 = vector.load %arg2[%c0_273, %c3_274, %c9_275, %c0_276, %c0_277] : memref<1x4x16x2x8xf32, #tpu.memory_space<vmem>>, vector<1x1x1x2x8xf32>
    %121 = vector.shape_cast %120 : vector<1x1x1x2x8xf32> to vector<2x8xf32>
    %c0_278 = arith.constant 0 : index
    %c3_279 = arith.constant 3 : index
    %c10_280 = arith.constant 10 : index
    %c0_281 = arith.constant 0 : index
    %c0_282 = arith.constant 0 : index
    %122 = vector.load %arg2[%c0_278, %c3_279, %c10_280, %c0_281, %c0_282] : memref<1x4x16x2x8xf32, #tpu.memory_space<vmem>>, vector<1x1x1x2x8xf32>
    %123 = vector.shape_cast %122 : vector<1x1x1x2x8xf32> to vector<2x8xf32>
    %c0_283 = arith.constant 0 : index
    %c3_284 = arith.constant 3 : index
    %c11_285 = arith.constant 11 : index
    %c0_286 = arith.constant 0 : index
    %c0_287 = arith.constant 0 : index
    %124 = vector.load %arg2[%c0_283, %c3_284, %c11_285, %c0_286, %c0_287] : memref<1x4x16x2x8xf32, #tpu.memory_space<vmem>>, vector<1x1x1x2x8xf32>
    %125 = vector.shape_cast %124 : vector<1x1x1x2x8xf32> to vector<2x8xf32>
    %c0_288 = arith.constant 0 : index
    %c3_289 = arith.constant 3 : index
    %c12_290 = arith.constant 12 : index
    %c0_291 = arith.constant 0 : index
    %c0_292 = arith.constant 0 : index
    %126 = vector.load %arg2[%c0_288, %c3_289, %c12_290, %c0_291, %c0_292] : memref<1x4x16x2x8xf32, #tpu.memory_space<vmem>>, vector<1x1x1x2x8xf32>
    %127 = vector.shape_cast %126 : vector<1x1x1x2x8xf32> to vector<2x8xf32>
    %c0_293 = arith.constant 0 : index
    %c3_294 = arith.constant 3 : index
    %c13_295 = arith.constant 13 : index
    %c0_296 = arith.constant 0 : index
    %c0_297 = arith.constant 0 : index
    %128 = vector.load %arg2[%c0_293, %c3_294, %c13_295, %c0_296, %c0_297] : memref<1x4x16x2x8xf32, #tpu.memory_space<vmem>>, vector<1x1x1x2x8xf32>
    %129 = vector.shape_cast %128 : vector<1x1x1x2x8xf32> to vector<2x8xf32>
    %c0_298 = arith.constant 0 : index
    %c3_299 = arith.constant 3 : index
    %c14_300 = arith.constant 14 : index
    %c0_301 = arith.constant 0 : index
    %c0_302 = arith.constant 0 : index
    %130 = vector.load %arg2[%c0_298, %c3_299, %c14_300, %c0_301, %c0_302] : memref<1x4x16x2x8xf32, #tpu.memory_space<vmem>>, vector<1x1x1x2x8xf32>
    %131 = vector.shape_cast %130 : vector<1x1x1x2x8xf32> to vector<2x8xf32>
    %c0_303 = arith.constant 0 : index
    %c3_304 = arith.constant 3 : index
    %c15_305 = arith.constant 15 : index
    %c0_306 = arith.constant 0 : index
    %c0_307 = arith.constant 0 : index
    %132 = vector.load %arg2[%c0_303, %c3_304, %c15_305, %c0_306, %c0_307] : memref<1x4x16x2x8xf32, #tpu.memory_space<vmem>>, vector<1x1x1x2x8xf32>
    %133 = vector.shape_cast %132 : vector<1x1x1x2x8xf32> to vector<2x8xf32>
    %134 = tpu.concatenate %71, %73, %75, %77, %79, %81, %83, %85, %87, %89, %91, %93, %95, %97, %99, %101 in 1 : vector<2x8xf32>, vector<2x8xf32>, vector<2x8xf32>, vector<2x8xf32>, vector<2x8xf32>, vector<2x8xf32>, vector<2x8xf32>, vector<2x8xf32>, vector<2x8xf32>, vector<2x8xf32>, vector<2x8xf32>, vector<2x8xf32>, vector<2x8xf32>, vector<2x8xf32>, vector<2x8xf32>, vector<2x8xf32> -> vector<2x128xf32>
    %135 = tpu.concatenate %103, %105, %107, %109, %111, %113, %115, %117, %119, %121, %123, %125, %127, %129, %131, %133 in 1 : vector<2x8xf32>, vector<2x8xf32>, vector<2x8xf32>, vector<2x8xf32>, vector<2x8xf32>, vector<2x8xf32>, vector<2x8xf32>, vector<2x8xf32>, vector<2x8xf32>, vector<2x8xf32>, vector<2x8xf32>, vector<2x8xf32>, vector<2x8xf32>, vector<2x8xf32>, vector<2x8xf32>, vector<2x8xf32> -> vector<2x128xf32>
    %136 = tpu.concatenate %134, %135 in 1 : vector<2x128xf32>, vector<2x128xf32> -> vector<2x256xf32>
    %c0_308 = arith.constant 0 : index
    %c1_309 = arith.constant 1 : index
    %c0_310 = arith.constant 0 : index
    %c0_311 = arith.constant 0 : index
    %137 = vector.load %arg3[%c0_308, %c1_309, %c0_310, %c0_311] : memref<1x2x2x256xf32, #tpu.memory_space<vmem>>, vector<1x1x2x256xf32>
    %138 = vector.shape_cast %137 : vector<1x1x2x256xf32> to vector<2x256xf32>
    %139 = vector.shape_cast %136 : vector<2x256xf32> to vector<1x1x2x256xf32>
    tpu.vector_store %arg3[%c0_308, %c1_309, %c0_310, %c0_311], %139 {strides = array<i32>} : memref<1x2x2x256xf32, #tpu.memory_space<vmem>>, vector<1x1x2x256xf32>,
    return
  }
  func.func @transform_0(%arg0: i32, %arg1: i32) -> (i32, i32, i32, i32, i32) {
    %c0_i32 = arith.constant 0 : i32
    %c0_i32_0 = arith.constant 0 : i32
    %c0_i32_1 = arith.constant 0 : i32
    %c0_i32_2 = arith.constant 0 : i32
    return %arg0, %c0_i32, %arg1, %c0_i32_0, %c0_i32_1 : i32, i32, i32, i32, i32
  }
  func.func @transform_1(%arg0: i32, %arg1: i32) -> (i32, i32, i32, i32) {
    %c0_i32 = arith.constant 0 : i32
    %c0_i32_0 = arith.constant 0 : i32
    %c0_i32_1 = arith.constant 0 : i32
    return %arg0, %arg1, %c0_i32, %c0_i32_0 : i32, i32, i32, i32
  }
}

</mosaic_0001>

<bundles_post_ra>
// kernel: tpu_custom_call.1
= control target key start
LH: loop header
LB: loop body
LE: loop exit
PB: predicated region body
PF: predicated region fallthrough
CT: control target
= control target key end

     0   :  { %6 = vsyncpa [#allocation3], 0  ;;  %s1273_s0 = inlined_call_operand.vmem [shape: f32[2,4,16,2,8], index: 0, kind: input, shape index: {}]   ;;  %s1274_s1 = inlined_call_operand.hbm [shape: f32[2,2,2,256], index: 1, kind: output, shape index: {}]  }
   0x1   :  { %8 = vsyncpa [#allocation3 + $0x1], 0  ;;  %s956_s6 = smov 0   ;;  %s958_s7 = smov 0  }
   0x2   :  { %s960_s8 = smov 0   ;;  %s962_s9 = smov 0  }
   0x3   :  { %s964_s10 = smov 0   ;;  %s966_s11 = smov 0  }
   0x4 LB: > { %s700_s12 = sadd.s32 4294967295, %s928_s11   ;;  %s701_s13 = sadd.s32 4294967294, %s928_s11   ;;  %s928_s11 = sphi %s966_s11, %s14_s11   ;;  %s924_s10 = sphi %s964_s10, %s1281_s10   ;;  %s920_s9 = sphi %s962_s9, %s1280_s9   ;;  %s916_s8 = sphi %s960_s8, %s1279_s8   ;;  %s912_s7 = sphi %s958_s7, %s1278_s7   ;;  %s908_s6 = sphi %s956_s6, %s1277_s6  }
   0x5   : > { %s26_s14 = sadd.s32 1, %s924_s10  ;;  %s63_s15 = sadd.s32 1, %s916_s8 }
   0x6   : > { %p28_p0 = scmp.ge.s32.totalorder %s26_s14, 2  ;;  %p73_p1 = scmp.ne.s32.totalorder %s916_s8, %s912_s7 }
   0x7   : > { %p74_p2 = scmp.eq.s32.totalorder %s700_s12, 1  ;;  %p79_p3 = scmp.ne.s32.totalorder %s912_s7, %s908_s6 }
   0x8   : > { %s1283_s14 = smov (%p28_p0, %s26_s14), 0  ;;  %p80_p5 = scmp.eq.s32.totalorder %s701_s13, 1 }
   0x9   : > { %p996_p4 = por %p74_p2, %p73_p1  ;;  %s58_s17 = ssub.s32 %s924_s10, %s1283_s14 }
   0xa   : > { %p704_p6 = scmp.ge.s32.totalorder %s928_s11, 1  ;;  %p61_p7 = scmp.eq.s32.totalorder %s58_s17, 0 }
   0xb   : > { %p1003_p8 = por %p80_p5, %p79_p3  ;;  %p111_p9 = scmp.lt.s32.totalorder %s928_s11, 3 }
   0xc   : > { %s1009_s19 = scalar_select %p61_p7, %s916_s8, %s63_s15  }
   0xd   : > { %p112_p10 = pnand %p704_p6, %p111_p9 }
   0xe   : > { %p136_p11 = scmp.lt.s32.totalorder (!%p112_p10), %s920_s9, 1  ;;  %s930_s25 = smov (!%p112_p10), 24  }
   0xf   : > { %115 = sbr.rel (%p112_p10) target bundleno = 300 (0x12c), region = 24  ;;  %s931_s26 = smov (!%p112_p10), 8  }
  0x10   : > { %s932_s27 = smov (!%p112_p10), 40   ;;  %s933_s28 = smov (!%p112_p10), 32  }
  0x11   : > { %s934_s29 = smov (!%p112_p10), 16   ;;  %s935_s30 = smov (!%p112_p10), 48  }
  0x12   : > { %s936_s2 = smov (!%p112_p10), 64   ;;  %s937_s3 = smov (!%p112_p10), 56  }
  0x13   : > { %s938_s4 = smov (!%p112_p10), 72   ;;  %s939_s5 = smov (!%p112_p10), 88  }
  0x14   : > { %s137_s20 = scalar_select %p136_p11, %s920_s9, 1  ;;  %vm269_vm0 = vcmask 64512   ;;  %vm271_vm1 = vcmask 130048   ;;  %vm273_vm2 = vcmask 195584   ;;  %vm275_vm3 = vcmask 261120  }
  0x15   : > { %s940_s12 = smov 80   ;;  %s941_s13 = smov 96   ;;  %vm277_vm4 = vcmask 326656   ;;  %vm279_vm5 = vcmask 392192   ;;  %vm281_vm6 = vcmask 457728   ;;  %vm283_vm7 = vcmask 523264  }
  0x16   : > { %s777_s21 = sshll.u32 %s137_s20, 7  ;;  %s942_s15 = smov 112   ;;  %vm285_vm8 = vcmask 588800   ;;  %vm287_vm9 = vcmask 654336   ;;  %vm289_vm10 = vcmask 719872   ;;  %vm291_vm11 = vcmask 785408  }
  0x17   : > { %s1016_s24 = scalar_lea.vmem %s1273_s0, %s777_s21  ;;  %s943_s17 = smov 104   ;;  %vm293_vm12 = vcmask 850944   ;;  %vm295_vm13 = vcmask 916480   ;;  %vm297_vm14 = vcmask 982016   ;;  %vm377_vm15 = vcmask 1041408  }
  0x18   : > { %v710_v0 = vld [vmem:[%s1016_s24 + $0x6] sm:$0x3]  ;;  %v708_v1 = vld [vmem:[%s1016_s24 + $0x2] sm:$0x3]  ;;  %v712_v2 = vld [vmem:[%s1016_s24 + $0xa] sm:$0x3] }
  0x19   : > { %218 = vrot.lane.b32.xlu1 %v710_v0, %s930_s25  ;;  %210 = vrot.lane.b32.xlu0 %v708_v1, %s931_s26  ;;  %v711_v3 = vld [vmem:[%s1016_s24 + $0x8] sm:$0x3]  ;;  %v709_v4 = vld [vmem:[%s1016_s24 + $0x4] sm:$0x3]  ;;  %s944_s20 = smov 120   ;;  %s132_s21 = sand.u32 1, %s912_s7  }
  0x1a   : > { %226 = vrot.lane.b32.xlu2 %v712_v2, %s932_s27  ;;  %v713_v5 = vld [vmem:[%s1016_s24 + $0xc] sm:$0x3]  ;;  %v715_v6 = vld [vmem:[%s1016_s24 + $0x20] sm:$0x3]  ;;  %v714_v7 = vld [vmem:[%s1016_s24 + $0xe] sm:$0x3] }
  0x1b   : > { %v716_v8 = vld [vmem:[%s1016_s24 + $0x22] sm:$0x3]  ;;  %v718_v9 = vld [vmem:[%s1016_s24 + $0x26] sm:$0x3]  ;;  %v717_v10 = vld [vmem:[%s1016_s24 + $0x24] sm:$0x3] }
  0x1c   : > { %v719_v11 = vld [vmem:[%s1016_s24 + $0x28] sm:$0x3]  ;;  %v721_v12 = vld [vmem:[%s1016_s24 + $0x2c] sm:$0x3]  ;;  %v720_v13 = vld [vmem:[%s1016_s24 + $0x2a] sm:$0x3] }
  0x1d   : > { %v722_v14 = vld [vmem:[%s1016_s24 + $0x2e] sm:$0x3]  ;;  %v725_v15 = vld [vmem:[%s1016_s24 + $0x44] sm:$0x3]  ;;  %v724_v16 = vld [vmem:[%s1016_s24 + $0x42] sm:$0x3] }
  0x1e   : > { %v726_v17 = vld [vmem:[%s1016_s24 + $0x46] sm:$0x3]  ;;  %v728_v18 = vld [vmem:[%s1016_s24 + $0x4a] sm:$0x3]  ;;  %v727_v19 = vld [vmem:[%s1016_s24 + $0x48] sm:$0x3] }
  0x1f   : > { %v729_v20 = vld [vmem:[%s1016_s24 + $0x4c] sm:$0x3]  ;;  %v731_v21 = vld [vmem:[%s1016_s24 + $0x60] sm:$0x3]  ;;  %v730_v22 = vld [vmem:[%s1016_s24 + $0x4e] sm:$0x3] }
  0x20   : > { %v732_v23 = vld [vmem:[%s1016_s24 + $0x62] sm:$0x3]  ;;  %v734_v24 = vld [vmem:[%s1016_s24 + $0x66] sm:$0x3]  ;;  %v733_v25 = vld [vmem:[%s1016_s24 + $0x64] sm:$0x3] }
  0x21   : > { %222 = vrot.lane.b32.xlu1 %v711_v3, %s933_s28  ;;  %214 = vrot.lane.b32.xlu0 %v709_v4, %s934_s29  ;;  %v735_v26 = vld [vmem:[%s1016_s24 + $0x68] sm:$0x3]  ;;  %v737_v27 = vld [vmem:[%s1016_s24 + $0x6c] sm:$0x3]  ;;  %s705_s22 = sshll.u32 %s132_s21, 3 }
  0x22   : > { %230 = vrot.lane.b32.xlu2 %v713_v5, %s935_s30  ;;  %v736_v28 = vld [vmem:[%s1016_s24 + $0x6a] sm:$0x3]  ;;  %v738_v29 = vld [vmem:[%s1016_s24 + $0x6e] sm:$0x3]  ;;  %v741_v30 = vld [vmem:[%s1016_s24 + $0x14] sm:$0x3] }
  0x23   : > { %v740_v31 = vld [vmem:[%s1016_s24 + $0x12] sm:$0x3]  ;;  %v742_v32 = vld [vmem:[%s1016_s24 + $0x16] sm:$0x3]  ;;  %v744_v33 = vld [vmem:[%s1016_s24 + $0x1a] sm:$0x3] }
  0x24   : > { %v743_v34 = vld [vmem:[%s1016_s24 + $0x18] sm:$0x3]  ;;  %v745_v35 = vld [vmem:[%s1016_s24 + $0x1c] sm:$0x3]  ;;  %v747_v36 = vld [vmem:[%s1016_s24 + $0x30] sm:$0x3] }
  0x25   : > { %v746_v37 = vld [vmem:[%s1016_s24 + $0x1e] sm:$0x3]  ;;  %v748_v39 = vld [vmem:[%s1016_s24 + $0x32] sm:$0x3]  ;;  %v750_v40 = vld [vmem:[%s1016_s24 + $0x36] sm:$0x3] }
  0x26   : > { %v749_v41 = vld [vmem:[%s1016_s24 + $0x34] sm:$0x3]  ;;  %v756_v43 = vld [vmem:[%s1016_s24 + $0x52] sm:$0x3]  ;;  %v758_v44 = vld [vmem:[%s1016_s24 + $0x56] sm:$0x3] }
  0x27   : > { %v757_v45 = vld [vmem:[%s1016_s24 + $0x54] sm:$0x3]  ;;  %v759_v47 = vld [vmem:[%s1016_s24 + $0x58] sm:$0x3]  ;;  %v761_v50 = vld [vmem:[%s1016_s24 + $0x5c] sm:$0x3] }
  0x28   : > { %v760_v51 = vld [vmem:[%s1016_s24 + $0x5a] sm:$0x3]  ;;  %v762_v53 = vld [vmem:[%s1016_s24 + $0x5e] sm:$0x3]  ;;  %v764_v56 = vld [vmem:[%s1016_s24 + $0x72] sm:$0x3] }
  0x29   : > { %238 = vrot.lane.b32.xlu1 %v715_v6, %s936_s2  ;;  %234 = vrot.lane.b32.xlu0 %v714_v7, %s937_s3  ;;  %v763_v57 = vld [vmem:[%s1016_s24 + $0x70] sm:$0x3]  ;;  %v765_v59 = vld [vmem:[%s1016_s24 + $0x74] sm:$0x3]  ;;  %s1195_s23 = scalar_lea.vmem [#allocation2], %s705_s22 }
  0x2a   : > { %242 = vrot.lane.b32.xlu2 %v716_v8, %s938_s4  ;;  %v767_v62 = vld [vmem:[%s1016_s24 + $0x78] sm:$0x3]  ;;  %v766_v63 = vld [vmem:[%s1016_s24 + $0x76] sm:$0x3]  ;;  %v768_v1 = vld [vmem:[%s1016_s24 + $0x7a] sm:$0x3] }
  0x2b   : > { %v769_v4 = vld [vmem:[%s1016_s24 + $0x7c] sm:$0x3]  ;;  %v751_v5 = vld [vmem:[%s1016_s24 + $0x38] sm:$0x3]  ;;  %v752_v7 = vld [vmem:[%s1016_s24 + $0x3a] sm:$0x3] }
  0x31   : > { %250 = vrot.lane.b32.xlu1 %v718_v9, %s939_s5  ;;  %246 = vrot.lane.b32.xlu0 %v717_v10, %s940_s12  ;;  %v753_v10 = vld [vmem:[%s1016_s24 + $0x3c] sm:$0x3] }
  0x32   : > { %254 = vrot.lane.b32.xlu2 %v719_v11, %s941_s13  ;;  %v770_v11 = vld [vmem:[%s1016_s24 + $0x7e] sm:$0x3] }
  0x39   : > { %262 = vrot.lane.b32.xlu1 %v721_v12, %s942_s15  ;;  %258 = vrot.lane.b32.xlu0 %v720_v13, %s943_s17  ;;  %v754_v13 = vld [vmem:[%s1016_s24 + $0x3e] sm:$0x3] }
  0x3a   : > { %266 = vrot.lane.b32.xlu2 %v722_v14, %s944_s20  ;;  %v146_v14 = vld [vmem:[%s1016_s24] sm:$0x3] }
  0x41   : > { %304 = vrot.lane.b32.xlu1 %v725_v15, %s934_s29  ;;  %300 = vrot.lane.b32.xlu0 %v724_v16, %s931_s26 }
  0x42   : > { %308 = vrot.lane.b32.xlu2 %v726_v17, %s930_s25  ;;  %v723_v17 = vld [vmem:[%s1016_s24 + $0x40] sm:$0x3] }
  0x49   : > { %316 = vrot.lane.b32.xlu1 %v728_v18, %s932_s27  ;;  %312 = vrot.lane.b32.xlu0 %v727_v19, %s933_s28 }
  0x4a   : > { %320 = vrot.lane.b32.xlu2 %v729_v20, %s935_s30 }
  0x51   : > { %328 = vrot.lane.b32.xlu1 %v731_v21, %s936_s2  ;;  %324 = vrot.lane.b32.xlu0 %v730_v22, %s937_s3 }
  0x52   : > { %332 = vrot.lane.b32.xlu2 %v732_v23, %s938_s4 }
  0x59   : > { %340 = vrot.lane.b32.xlu1 %v734_v24, %s939_s5  ;;  %336 = vrot.lane.b32.xlu0 %v733_v25, %s940_s12 }
  0x5a   : > { %344 = vrot.lane.b32.xlu2 %v735_v26, %s941_s13 }
  0x61   : > { %352 = vrot.lane.b32.xlu1 %v737_v27, %s942_s15  ;;  %348 = vrot.lane.b32.xlu0 %v736_v28, %s943_s17 }
  0x62   : > { %356 = vrot.lane.b32.xlu2 %v738_v29, %s944_s20 }
  0x69   : > { %450 = vrot.lane.b32.xlu1 %v741_v30, %s934_s29  ;;  %446 = vrot.lane.b32.xlu0 %v740_v31, %s931_s26 }
  0x6a   : > { %454 = vrot.lane.b32.xlu2 %v742_v32, %s930_s25 }
  0x71   : > { %462 = vrot.lane.b32.xlu1 %v744_v33, %s932_s27  ;;  %458 = vrot.lane.b32.xlu0 %v743_v34, %s933_s28 }
  0x72   : > { %466 = vrot.lane.b32.xlu2 %v745_v35, %s935_s30 }
  0x74   : > { %v1092_v38 = vpop.permute.xlu2 %226 }
  0x79   : > { %474 = vrot.lane.b32.xlu1 %v747_v36, %s936_s2  ;;  %470 = vrot.lane.b32.xlu0 %v746_v37, %s937_s3 }
  0x7a   : > { %478 = vrot.lane.b32.xlu2 %v748_v39, %s938_s4 }
  0x7c   : > { %v1100_v42 = vpop.permute.xlu2 %230 }
  0x81   : > { %486 = vrot.lane.b32.xlu1 %v750_v40, %s939_s5  ;;  %482 = vrot.lane.b32.xlu0 %v749_v41, %s940_s12 }
  0x82   : > { %521 = vrot.lane.b32.xlu2 %v756_v43, %s931_s26 }
  0x84   : > { %v1108_v46 = vpop.permute.xlu2 %242 }
  0x89   : > { %529 = vrot.lane.b32.xlu1 %v758_v44, %s930_s25  ;;  %525 = vrot.lane.b32.xlu0 %v757_v45, %s934_s29  ;;  %s603_s29 = scalar_lea.sflag [#allocation3], %s132_s21 }
  0x8a   : > { %533 = vrot.lane.b32.xlu2 %v759_v47, %s933_s28  ;;  %s618_s28 = sshll.u32 %s1195_s23, 4  ;;  %s619_s28 = int_to_ptr.vmem [resolvable:$true] %s618_s28 }
  0x8b   : > { %v219_v48 = vpop.permute.xlu1 %218  ;;  %v211_v49 = vpop.permute.xlu0 %210 }
  0x8c   : > { %v1116_v52 = vpop.permute.xlu2 %254  ;;  %v270_v18 = vsel %vm269_vm0, %v146_v14, %v211_v49 }
  0x91   : > { %541 = vrot.lane.b32.xlu1 %v761_v50, %s935_s30  ;;  %537 = vrot.lane.b32.xlu0 %v760_v51, %s932_s27 }
  0x92   : > { %545 = vrot.lane.b32.xlu2 %v762_v53, %s937_s3 }
  0x93   : > { %v223_v54 = vpop.permute.xlu1 %222  ;;  %v215_v55 = vpop.permute.xlu0 %214 }
  0x94   : > { %v1124_v58 = vpop.permute.xlu2 %266  ;;  %v272_v20 = vsel %vm271_vm1, %v270_v18, %v215_v55 }
  0x95   : > { %v274_v22 = vsel %vm273_vm2, %v272_v20, %v219_v48 }
  0x96   : > { %v276_v26 = vsel %vm275_vm3, %v274_v22, %v223_v54 }
  0x97   : > { %v278_v30 = vsel %vm277_vm4, %v276_v26, %v1092_v38 }
  0x98   : > { %v280_v32 = vsel %vm279_vm5, %v278_v30, %v1100_v42 }
  0x99   : > { %553 = vrot.lane.b32.xlu1 %v764_v56, %s938_s4  ;;  %549 = vrot.lane.b32.xlu0 %v763_v57, %s936_s2 }
  0x9a   : > { %557 = vrot.lane.b32.xlu2 %v765_v59, %s940_s12  ;;  %s870_s12 = scalar_lea.hbm %s1274_s1, 16 }
  0x9b   : > { %v239_v60 = vpop.permute.xlu1 %238  ;;  %v235_v61 = vpop.permute.xlu0 %234 }
  0x9c   : > { %v309_v0 = vpop.permute.xlu2 %308  ;;  %v282_v35 = vsel %vm281_vm6, %v280_v32, %v235_v61 }
  0x9d   : > { %v284_v39 = vsel %vm283_vm7, %v282_v35, %v239_v60 }
  0x9e   : > { %v286_v41 = vsel %vm285_vm8, %v284_v39, %v1108_v46 }
  0xa1   : > { %565 = vrot.lane.b32.xlu1 %v767_v62, %s941_s13  ;;  %561 = vrot.lane.b32.xlu0 %v766_v63, %s939_s5 }
  0xa2   : > { %569 = vrot.lane.b32.xlu2 %v768_v1, %s943_s17 }
  0xa3   : > { %v1135_v2 = vpop.permute.xlu1 %250  ;;  %v247_v3 = vpop.permute.xlu0 %246 }
  0xa4   : > { %v321_v6 = vpop.permute.xlu2 %320  ;;  %v288_v42 = vsel %vm287_vm9, %v286_v41, %v247_v3 }
  0xa5   : > { %v290_v48 = vsel %vm289_vm10, %v288_v42, %v1135_v2 }
  0xa6   : > { %v292_v46 = vsel %vm291_vm11, %v290_v48, %v1116_v52 }
  0xa9   : > { %573 = vrot.lane.b32.xlu1 %v769_v4, %s942_s15  ;;  %490 = vrot.lane.b32.xlu0 %v751_v5, %s941_s13 }
  0xaa   : > { %494 = vrot.lane.b32.xlu2 %v752_v7, %s943_s17 }
  0xab   : > { %v1143_v8 = vpop.permute.xlu1 %262  ;;  %v259_v9 = vpop.permute.xlu0 %258 }
  0xac   : > { %v333_v12 = vpop.permute.xlu2 %332  ;;  %v294_v50 = vsel %vm293_vm12, %v292_v46, %v259_v9 }
  0xad   : > { %v296_v57 = vsel %vm295_vm13, %v294_v50, %v1143_v8 }
  0xae   : > { %v298_v61 = vsel %vm297_vm14, %v296_v57, %v1124_v58 }
  0xb1   : > { %498 = vrot.lane.b32.xlu1 %v753_v10, %s942_s15  ;;  %577 = vrot.lane.b32.xlu0 %v770_v11, %s944_s20 }
  0xb2   : > { %502 = vrot.lane.b32.xlu2 %v754_v13, %s944_s20 }
  0xb3   : > { %v305_v15 = vpop.permute.xlu1 %304  ;;  %v301_v16 = vpop.permute.xlu0 %300 }
  0xb4   : > { %v345_v19 = vpop.permute.xlu2 %344  ;;  %v359_v21 = vsel %vm269_vm0, %v723_v17, %v301_v16 }
  0xb5   : > { %v360_v23 = vsel %vm271_vm1, %v359_v21, %v305_v15  ;;  %v739_v15 = vld [vmem:[%s1016_s24 + $0x10] sm:$0x3] }
  0xb6   : > { %v361_v27 = vsel %vm273_vm2, %v360_v23, %v309_v0 }
  0xbb   : > { %v317_v24 = vpop.permute.xlu1 %316  ;;  %v313_v25 = vpop.permute.xlu0 %312 }
  0xbc   : > { %v357_v28 = vpop.permute.xlu2 %356  ;;  %v362_v29 = vsel %vm275_vm3, %v361_v27, %v313_v25 }
  0xbd   : > { %v363_v31 = vsel %vm277_vm4, %v362_v29, %v317_v24 }
  0xbe   : > { %v364_v36 = vsel %vm279_vm5, %v363_v31, %v321_v6 }
  0xc3   : > { %v329_v33 = vpop.permute.xlu1 %328  ;;  %v325_v34 = vpop.permute.xlu0 %324 }
  0xc4   : > { %v365_v37 = vsel %vm281_vm6, %v364_v36, %v325_v34  ;;  %v455_v38 = vpop.permute.xlu2 %454 }
  0xc5   : > { %v366_v40 = vsel %vm283_vm7, %v365_v37, %v329_v33 }
  0xc6   : > { %v367_v45 = vsel %vm285_vm8, %v366_v40, %v333_v12  ;;  %v755_v12 = vld [vmem:[%s1016_s24 + $0x50] sm:$0x3]  ;;  %s778_s24 = sshll.u32 %s920_s9, 3 }
  0xc7   : > { %s617_s27 = scalar_lea.hbm %s1274_s1, %s778_s24 }
  0xc8   : > { %s620_s9 = sshll.u32 %s617_s27, 4  ;;  %s621_s9 = int_to_ptr.hbm [resolvable:$true] %s620_s9 }
  0xc9   : > { %s864_s30 = sshra.s32 %s621_s9, 4  ;;  %s865_s30 = int_to_ptr.hbm [resolvable:$true] %s864_s30 }
  0xca   : > { %s866_s3 = scalar_lea.hbm %s865_s30, 8  ;;  %p871_p1 = scmp.lt.s32.totalorder %s865_s30, %s1274_s1 }
  0xcb   : > { %v341_v43 = vpop.permute.xlu1 %340  ;;  %v337_v44 = vpop.permute.xlu0 %336  ;;  %p867_p12 = scmp.ne.s32.totalorder %s865_s30, %s866_s3  ;;  %p872_p2 = scmp.lt.s32.totalorder %s870_s12, %s866_s3 }
  0xcc   : > { %v368_v47 = vsel %vm287_vm9, %v367_v45, %v337_v44  ;;  %v467_v51 = vpop.permute.xlu2 %466 }
  0xcd   : > { %v369_v49 = vsel %vm289_vm10, %v368_v47, %v341_v43  ;;  %p868_p13 = pnand %p867_p12, %p996_p4  ;;  %p873_p3 = por %p872_p2, %p871_p1 }
  0xce   : > { %v370_v53 = vsel %vm291_vm11, %v369_v49, %v345_v19 }
  0xcf   : > { %p869_p0 = pneg %p868_p13 }
  0xd1   : > { %p874_p5 = pnand %p873_p3, %p869_p0 }
  0xd3   : > { %v353_v54 = vpop.permute.xlu1 %352  ;;  %v349_v55 = vpop.permute.xlu0 %348 }
  0xd4   : > { %v371_v56 = vsel %vm293_vm12, %v370_v53, %v349_v55  ;;  %v479_v1 = vpop.permute.xlu2 %478 }
  0xd5   : > { %v372_v59 = vsel %vm295_vm13, %v371_v56, %v353_v54 }
  0xd6   : > { %v373_v52 = vsel %vm297_vm14, %v372_v59, %v357_v28 }
  0xd7   : > { %v376_v60 = vrot.slane %v373_v52, 6 }
  0xd9   : > { %v378_v62 = vsel %vm377_vm15, %v298_v61, %v376_v60 }
  0xda   : > { %380 = vst [vmem:[%s1195_s23] sm:$0xf] %v378_v62 }
  0xdb   : > { %v451_v63 = vpop.permute.xlu1 %450  ;;  %v447_v0 = vpop.permute.xlu0 %446 }
  0xdc   : > { %v522_v4 = vpop.permute.xlu2 %521  ;;  %v505_v18 = vsel %vm269_vm0, %v739_v15, %v447_v0 }
  0xdd   : > { %v580_v17 = vsel %vm269_vm0, %v755_v12, %v522_v4  ;;  %v506_v20 = vsel %vm271_vm1, %v505_v18, %v451_v63 }
  0xde   : > { %v507_v24 = vsel %vm273_vm2, %v506_v20, %v455_v38 }
  0xe3   : > { %v463_v2 = vpop.permute.xlu1 %462  ;;  %v459_v3 = vpop.permute.xlu0 %458 }
  0xe4   : > { %v534_v7 = vpop.permute.xlu2 %533  ;;  %v508_v26 = vsel %vm275_vm3, %v507_v24, %v459_v3 }
  0xe5   : > { %v509_v29 = vsel %vm277_vm4, %v508_v26, %v463_v2 }
  0xe6   : > { %v510_v33 = vsel %vm279_vm5, %v509_v29, %v467_v51 }
  0xeb   : > { %v475_v5 = vpop.permute.xlu1 %474  ;;  %v471_v6 = vpop.permute.xlu0 %470 }
  0xec   : > { %v546_v58 = vpop.permute.xlu2 %545  ;;  %v511_v35 = vsel %vm281_vm6, %v510_v33, %v471_v6 }
  0xed   : > { %v512_v37 = vsel %vm283_vm7, %v511_v35, %v475_v5 }
  0xee   : > { %v513_v40 = vsel %vm285_vm8, %v512_v37, %v479_v1 }
  0xf3   : > { %v487_v8 = vpop.permute.xlu1 %486  ;;  %v483_v9 = vpop.permute.xlu0 %482 }
  0xf4   : > { %v558_v16 = vpop.permute.xlu2 %557  ;;  %v514_v44 = vsel %vm287_vm9, %v513_v40, %v483_v9 }
  0xf5   : > { %v515_v48 = vsel %vm289_vm10, %v514_v44, %v487_v8 }
  0xfb   : > { %v530_v10 = vpop.permute.xlu1 %529  ;;  %v526_v11 = vpop.permute.xlu0 %525 }
  0xfc   : > { %v581_v19 = vsel %vm271_vm1, %v580_v17, %v526_v11  ;;  %v570_v28 = vpop.permute.xlu2 %569 }
  0xfd   : > { %v582_v21 = vsel %vm273_vm2, %v581_v19, %v530_v10 }
  0xfe   : > { %v583_v25 = vsel %vm275_vm3, %v582_v21, %v534_v7 }
 0x103   : > { %v542_v13 = vpop.permute.xlu1 %541  ;;  %v538_v14 = vpop.permute.xlu0 %537 }
 0x104   : > { %v584_v27 = vsel %vm277_vm4, %v583_v25, %v538_v14  ;;  %v495_v38 = vpop.permute.xlu2 %494 }
 0x105   : > { %v585_v30 = vsel %vm279_vm5, %v584_v27, %v542_v13 }
 0x106   : > { %v586_v34 = vsel %vm281_vm6, %v585_v30, %v546_v58 }
 0x10b   : > { %v554_v22 = vpop.permute.xlu1 %553  ;;  %v550_v23 = vpop.permute.xlu0 %549 }
 0x10c   : > { %v587_v36 = vsel %vm283_vm7, %v586_v34, %v550_v23  ;;  %v503_v50 = vpop.permute.xlu2 %502 }
 0x10d   : > { %v588_v39 = vsel %vm285_vm8, %v587_v36, %v554_v22 }
 0x10e   : > { %v589_v41 = vsel %vm287_vm9, %v588_v39, %v558_v16 }
 0x113   : > { %v566_v31 = vpop.permute.xlu1 %565  ;;  %v562_v32 = vpop.permute.xlu0 %561 }
 0x114   : > { %v590_v45 = vsel %vm289_vm10, %v589_v41, %v562_v32 }
 0x115   : > { %v591_v47 = vsel %vm291_vm11, %v590_v45, %v566_v31 }
 0x116   : > { %v592_v46 = vsel %vm293_vm12, %v591_v47, %v570_v28 }
 0x11b   : > { %v574_v42 = vpop.permute.xlu1 %573  ;;  %v491_v43 = vpop.permute.xlu0 %490 }
 0x11c   : > { %v516_v49 = vsel %vm291_vm11, %v515_v48, %v491_v43  ;;  %v593_v51 = vsel %vm295_vm13, %v592_v46, %v574_v42 }
 0x11d   : > { %v517_v53 = vsel %vm293_vm12, %v516_v49, %v495_v38 }
 0x123   : > { %v499_v54 = vpop.permute.xlu1 %498  ;;  %v578_v55 = vpop.permute.xlu0 %577 }
 0x124   : > { %v518_v56 = vsel %vm295_vm13, %v517_v53, %v499_v54  ;;  %v594_v57 = vsel %vm297_vm14, %v593_v51, %v578_v55 }
 0x125   : > { %v597_v59 = vrot.slane %v594_v57, 6  ;;  %v519_v52 = vsel %vm297_vm14, %v518_v56, %v503_v50 }
 0x127   : > { %v598_v60 = vsel %vm377_vm15, %v519_v52, %v597_v59 }
 0x128   : > { %771 = vst [vmem:[%s1195_s23 + $0x4] sm:$0xf] %v598_v60 }
 0x129   : > { %877 = shalt.err (!%p874_p5)
}
 0x12a   : > { %s945_s17 = smov 4  }
 0x12b   : > { %779 = dma.vmem_to_hbm [thread:$0]  (%p996_p4), %s619_s28, 128, %s621_s9, %s603_s29, %s936_s2, %s936_s2, %s945_s17  }
 0x12c PF: > { %p785_p6 = scmp.ge.s32.totalorder %s928_s11, 2  ;;  %s635_s20 = sand.u32 1, %s908_s6  }
 0x12d   : > { %s636_s21 = scalar_lea.sflag [#allocation3], %s635_s20 }
 0x12e   : > { %p782_p7 = pnand %p785_p6, %p1003_p8 }
 0x130   : > { %p783_p9 = pneg %p782_p7 }
 0x132   : > { %903 = dma.done.wait (%p783_p9), %s636_s21, 128  }
 0x133   : > { %905 = vsyncadd (%p783_p9), %s636_s21, 4294967168  ;;  %s14_s11 = sadd.s32 1, %s928_s11   ;;  %s1277_s6 = smov %s912_s7 }
 0x134   : > { %p11_p10 = scmp.ge.s32.totalorder %s14_s11, 4   ;;  %s1278_s7 = smov %s916_s8 }
 0x135   : > { %s1279_s8 = smov %s1009_s19  ;;  %s1280_s9 = smov %s924_s10 }
 0x136   : > { %s1281_s10 = smov %s1283_s14  ;;  %13 = sbr.rel (!%p11_p10) target bundleno = 4 (0x4), region = 123 }
 0x13b   :  { %642 = vsyncpa [#allocation3], 1 }
 0x13c   :  { %644 = vsyncpa [#allocation3 + $0x1], 1 }

</bundles_post_ra>
